<compile_context>
chip_gen: v7x
topology: tpu7x:2x2x1
jax: 0.10.0
libtpu: 0.0.40
codegen_flags: <defaults>
</compile_context>

<pallas_src>
import functools

import jax
import jax.numpy as jnp
from jax import lax
from jax.experimental import pallas as pl
from jax.experimental.pallas import tpu as pltpu


def rl_policy_kernel(x_ref, w1_ref, b1_ref, w2_ref, b2_ref, w3t_ref, b3_ref, o_ref):
    # Layer 1: (TILE_B, in) @ (in, hidden) -> bias -> ReLU.   All f32.
    h1 = jnp.dot(x_ref[...], w1_ref[...], preferred_element_type=jnp.float32)
    h1 = jnp.maximum(h1 + b1_ref[...], 0.0)

    # Layer 2: (TILE_B, hidden) @ (hidden, hidden//2) -> bias -> ReLU.
    h2 = jnp.dot(h1, w2_ref[...], preferred_element_type=jnp.float32)
    h2 = jnp.maximum(h2 + b2_ref[...], 0.0)

    # Layer 3, computed transposed so the store is lane-dense:
    #   out_T[a, b] = sum_k w3t[a, k] * h2[b, k]   -> (n_act, TILE_B)
    out_t = lax.dot_general(
        w3t_ref[...], h2,
        dimension_numbers=(((1,), (1,)), ((), ())),
        preferred_element_type=jnp.float32,
    )
    o_ref[...] = (out_t + b3_ref[...]).astype(o_ref.dtype)


@functools.partial(jax.jit, static_argnames=("tile_b",))
def rl_policy_forward(x, params, *, tile_b=1024):
    """x: (B, input_dim) float32.  params: w1/w2 (in,out), w3t (n_act, hidden//2),
    b1/b2 (1,out), b3 (n_act,1), all float32."""
    w1, b1 = params["w1"], params["b1"]
    w2, b2 = params["w2"], params["b2"]
    w3t, b3 = params["w3t"], params["b3"]

    B, in_dim = x.shape
    n_act = w3t.shape[0]

    if B <= tile_b:
        # Single exact-size tile: block dims equal the full array dims, no masking.
        tile_b = B
    else:
        # Multi-tile: keep the tile a multiple of 128 so the transposed output store
        # is lane-dense and the x block satisfies the (8, 128) tiling rule; the last
        # partial block (if any) is handled by Pallas boundary masking.
        tile_b = max(128, (tile_b // 128) * 128)
    n_tiles = pl.cdiv(B, tile_b)

    resident = lambda shape: pl.BlockSpec(shape, lambda i: (0, 0))  # VMEM-resident

    out_t = pl.pallas_call(
        rl_policy_kernel,
        out_shape=jax.ShapeDtypeStruct((n_act, B), jnp.float32),
        grid=(n_tiles,),
        in_specs=[
            pl.BlockSpec((tile_b, in_dim), lambda i: (i, 0)),   # x streams in tiles
            resident(w1.shape), resident(b1.shape),
            resident(w2.shape), resident(b2.shape),
            resident(w3t.shape), resident(b3.shape),
        ],
        out_specs=pl.BlockSpec((n_act, tile_b), lambda i: (0, i)),  # lane-dense store
        compiler_params=pltpu.CompilerParams(dimension_semantics=("parallel",)),
    )(x, w1, b1, w2, b2, w3t, b3)

    return out_t.T  # (B, n_act) float32


def init_params(key, input_dim, hidden_dim=128):
    """Deterministic init matching nn.Linear's U(-1/sqrt(fan_in), 1/sqrt(fan_in)),
    stored once in the layout the kernel consumes (no per-call transposes/casts)."""
    dims = [(input_dim, hidden_dim), (hidden_dim, hidden_dim // 2), (hidden_dim // 2, 2)]
    raw = {}
    for i, (fan_in, fan_out) in enumerate(dims, start=1):
        key, kw, kb = jax.random.split(key, 3)
        bound = 1.0 / jnp.sqrt(jnp.float32(fan_in))
        raw[f"w{i}"] = jax.random.uniform(kw, (fan_in, fan_out), jnp.float32, -bound, bound)
        raw[f"b{i}"] = jax.random.uniform(kb, (1, fan_out), jnp.float32, -bound, bound)
    return {
        "w1": raw["w1"], "b1": raw["b1"],          # (in, hidden), (1, hidden)
        "w2": raw["w2"], "b2": raw["b2"],          # (hidden, hidden//2), (1, hidden//2)
        "w3t": raw["w3"].T,                        # (n_act, hidden//2)
        "b3": raw["b3"].reshape(-1, 1),            # (n_act, 1)
    }


def reference_forward(x, params):
    """Pure-JAX f32 reference (same math as the PyTorch module)."""
    h = jnp.maximum(jnp.dot(x, params["w1"]) + params["b1"], 0.0)
    h = jnp.maximum(jnp.dot(h, params["w2"]) + params["b2"], 0.0)
    return jnp.dot(h, params["w3t"].T) + params["b3"].reshape(1, -1)


if __name__ == "__main__":
    key = jax.random.PRNGKey(0)
    batch, input_dim, hidden_dim = 8, 32, 128

    key, kx = jax.random.split(key)
    x = jax.random.normal(kx, (batch, input_dim), jnp.float32)
    params = init_params(key, input_dim, hidden_dim)

    logits = rl_policy_forward(x, params)
    jax.block_until_ready(logits)

    ref = reference_forward(x, params)
    assert logits.shape == (batch, 2)
    assert jnp.allclose(logits, ref, atol=1e-2, rtol=1e-2), "mismatch vs reference"
    print("KERNEL_OK")
</pallas_src>

<mosaic_0001>
module attributes {stable_mosaic.version = 11 : i64} {
  func.func @rl_policy_kernel(%arg0: i32, %arg1: memref<8x32xf32, #tpu.memory_space<vmem>>, %arg2: memref<32x128xf32, #tpu.memory_space<vmem>>, %arg3: memref<1x128xf32, #tpu.memory_space<vmem>>, %arg4: memref<128x64xf32, #tpu.memory_space<vmem>>, %arg5: memref<1x64xf32, #tpu.memory_space<vmem>>, %arg6: memref<2x64xf32, #tpu.memory_space<vmem>>, %arg7: memref<2x1xf32, #tpu.memory_space<vmem>>, %arg8: memref<2x8xf32, #tpu.memory_space<vmem>>) attributes {dimension_semantics = [#tpu.dimension_semantics<parallel>], iteration_bounds = array<i64: 1>, scalar_prefetch = 0 : i64, scratch_operands = 0 : i64, tpu.core_type = #tpu.core_type<tc>, window_params = [{transform_indices = @transform_0, window_bounds = array<i64: 8, 32>}, {pipeline_mode = #tpu.pipeline_mode<synchronous>, transform_indices = @transform_1, window_bounds = array<i64: 32, 128>}, {pipeline_mode = #tpu.pipeline_mode<synchronous>, transform_indices = @transform_2, window_bounds = array<i64: 1, 128>}, {pipeline_mode = #tpu.pipeline_mode<synchronous>, transform_indices = @transform_3, window_bounds = array<i64: 128, 64>}, {pipeline_mode = #tpu.pipeline_mode<synchronous>, transform_indices = @transform_4, window_bounds = array<i64: 1, 64>}, {pipeline_mode = #tpu.pipeline_mode<synchronous>, transform_indices = @transform_5, window_bounds = array<i64: 2, 64>}, {pipeline_mode = #tpu.pipeline_mode<synchronous>, transform_indices = @transform_6, window_bounds = array<i64: 2, 1>}, {transform_indices = @transform_7, window_bounds = array<i64: 2, 8>}]} {
    %c0 = arith.constant 0 : index
    %c0_0 = arith.constant 0 : index
    %0 = vector.load %arg1[%c0, %c0_0] : memref<8x32xf32, #tpu.memory_space<vmem>>, vector<8x32xf32>
    %c0_1 = arith.constant 0 : index
    %c0_2 = arith.constant 0 : index
    %1 = vector.load %arg2[%c0_1, %c0_2] : memref<32x128xf32, #tpu.memory_space<vmem>>, vector<32x128xf32>
    %cst = arith.constant dense<0.000000e+00> : vector<8x128xf32>
    %2 = tpu.matmul %0, %1, %cst {dimension_numbers = #tpu.dot_dimension_numbers<[1], [0], [0], [1], [0, 0, 1, 1], [], []>} : vector<8x32xf32>, vector<32x128xf32>, vector<8x128xf32> -> vector<8x128xf32>
    %c0_3 = arith.constant 0 : index
    %c0_4 = arith.constant 0 : index
    %3 = vector.load %arg3[%c0_3, %c0_4] : memref<1x128xf32, #tpu.memory_space<vmem>>, vector<1x128xf32>
    %4 = vector.broadcast %3 : vector<1x128xf32> to vector<8x128xf32>
    %5 = arith.addf %2, %4 : vector<8x128xf32>
    %cst_5 = arith.constant 0.000000e+00 : f32
    %6 = vector.broadcast %cst_5 : f32 to vector<8x128xf32>
    %7 = arith.maximumf %5, %6 : vector<8x128xf32>
    %c0_6 = arith.constant 0 : index
    %c0_7 = arith.constant 0 : index
    %8 = vector.load %arg4[%c0_6, %c0_7] : memref<128x64xf32, #tpu.memory_space<vmem>>, vector<128x64xf32>
    %cst_8 = arith.constant dense<0.000000e+00> : vector<8x64xf32>
    %9 = tpu.matmul %7, %8, %cst_8 {dimension_numbers = #tpu.dot_dimension_numbers<[1], [0], [0], [1], [0, 0, 1, 1], [], []>} : vector<8x128xf32>, vector<128x64xf32>, vector<8x64xf32> -> vector<8x64xf32>
    %c0_9 = arith.constant 0 : index
    %c0_10 = arith.constant 0 : index
    %10 = vector.load %arg5[%c0_9, %c0_10] : memref<1x64xf32, #tpu.memory_space<vmem>>, vector<1x64xf32>
    %11 = vector.broadcast %10 : vector<1x64xf32> to vector<8x64xf32>
    %12 = arith.addf %9, %11 : vector<8x64xf32>
    %cst_11 = arith.constant 0.000000e+00 : f32
    %13 = vector.broadcast %cst_11 : f32 to vector<8x64xf32>
    %14 = arith.maximumf %12, %13 : vector<8x64xf32>
    %c0_12 = arith.constant 0 : index
    %c0_13 = arith.constant 0 : index
    %15 = vector.load %arg6[%c0_12, %c0_13] : memref<2x64xf32, #tpu.memory_space<vmem>>, vector<2x64xf32>
    %cst_14 = arith.constant dense<0.000000e+00> : vector<2x8xf32>
    %16 = tpu.matmul %15, %14, %cst_14 {dimension_numbers = #tpu.dot_dimension_numbers<[1], [1], [0], [0], [0, 0, 1, 0], [], []>} : vector<2x64xf32>, vector<8x64xf32>, vector<2x8xf32> -> vector<2x8xf32>
    %c0_15 = arith.constant 0 : index
    %c0_16 = arith.constant 0 : index
    %17 = vector.load %arg7[%c0_15, %c0_16] : memref<2x1xf32, #tpu.memory_space<vmem>>, vector<2x1xf32>
    %18 = vector.broadcast %17 : vector<2x1xf32> to vector<2x8xf32>
    %19 = arith.addf %16, %18 : vector<2x8xf32>
    %c0_17 = arith.constant 0 : index
    %c0_18 = arith.constant 0 : index
    %20 = vector.load %arg8[%c0_17, %c0_18] : memref<2x8xf32, #tpu.memory_space<vmem>>, vector<2x8xf32>
    tpu.vector_store %arg8[%c0_17, %c0_18], %19 {strides = array<i32>} : memref<2x8xf32, #tpu.memory_space<vmem>>, vector<2x8xf32>,
    return
  }
  func.func @transform_0(%arg0: i32) -> (i32, i32) {
    %c0_i32 = arith.constant 0 : i32
    %c0_i32_0 = arith.constant 0 : i32
    return %arg0, %c0_i32 : i32, i32
  }
  func.func @transform_1(%arg0: i32) -> (i32, i32) {
    %c0_i32 = arith.constant 0 : i32
    %c0_i32_0 = arith.constant 0 : i32
    %c0_i32_1 = arith.constant 0 : i32
    return %c0_i32, %c0_i32_0 : i32, i32
  }
  func.func @transform_2(%arg0: i32) -> (i32, i32) {
    %c0_i32 = arith.constant 0 : i32
    %c0_i32_0 = arith.constant 0 : i32
    %c0_i32_1 = arith.constant 0 : i32
    return %c0_i32, %c0_i32_0 : i32, i32
  }
  func.func @transform_3(%arg0: i32) -> (i32, i32) {
    %c0_i32 = arith.constant 0 : i32
    %c0_i32_0 = arith.constant 0 : i32
    %c0_i32_1 = arith.constant 0 : i32
    return %c0_i32, %c0_i32_0 : i32, i32
  }
  func.func @transform_4(%arg0: i32) -> (i32, i32) {
    %c0_i32 = arith.constant 0 : i32
    %c0_i32_0 = arith.constant 0 : i32
    %c0_i32_1 = arith.constant 0 : i32
    return %c0_i32, %c0_i32_0 : i32, i32
  }
  func.func @transform_5(%arg0: i32) -> (i32, i32) {
    %c0_i32 = arith.constant 0 : i32
    %c0_i32_0 = arith.constant 0 : i32
    %c0_i32_1 = arith.constant 0 : i32
    return %c0_i32, %c0_i32_0 : i32, i32
  }
  func.func @transform_6(%arg0: i32) -> (i32, i32) {
    %c0_i32 = arith.constant 0 : i32
    %c0_i32_0 = arith.constant 0 : i32
    %c0_i32_1 = arith.constant 0 : i32
    return %c0_i32, %c0_i32_0 : i32, i32
  }
  func.func @transform_7(%arg0: i32) -> (i32, i32) {
    %c0_i32 = arith.constant 0 : i32
    %c0_i32_0 = arith.constant 0 : i32
    return %c0_i32, %arg0 : i32, i32
  }
}

</mosaic_0001>

<bundles_post_ra>
// kernel: rl_policy_forward.1
= control target key start
LH: loop header
LB: loop body
LE: loop exit
PB: predicated region body
PF: predicated region fallthrough
CT: control target
= control target key end

     0   :  { %v448_v3 = vmov 0.0|0.0   ;;  %vm449_vm0 = vmmov 0   ;;  %v450_v6 = vmov 0.0   ;;  %s583_s0 = inlined_call_operand.vmem [shape: f32[8,32], index: 0, kind: input, shape index: {}]   ;;  %s584_s1 = inlined_call_operand.vmem [shape: f32[32,128], index: 1, kind: input, shape index: {}]   ;;  %s585_s2 = inlined_call_operand.vmem [shape: f32[1,128], index: 2, kind: input, shape index: {}]   ;;  %s586_s3 = inlined_call_operand.vmem [shape: f32[128,64], index: 3, kind: input, shape index: {}]   ;;  %s587_s4 = inlined_call_operand.vmem [shape: f32[1,64], index: 4, kind: input, shape index: {}]   ;;  %s588_s5 = inlined_call_operand.vmem [shape: f32[2,64], index: 5, kind: input, shape index: {}]   ;;  %s589_s6 = inlined_call_operand.vmem [shape: f32[2,1], index: 6, kind: input, shape index: {}]   ;;  %s590_s7 = inlined_call_operand.hbm [shape: f32[2,8], index: 7, kind: output, shape index: {}]  }
   0x1   :  { %v28_v0 = vld [vmem:[%s584_s1] sm:$0xff]  ;;  %v29_v1 = vld [vmem:[%s584_s1 + $0x8] sm:$0xff]  ;;  %v30_v2 = vld [vmem:[%s584_s1 + $0x10] sm:$0xff]  ;;  %388 = vmatprep.subr.bf16.mxu0 %v448_v3  ;;  %345 = vmatprep.mubr.msk.f32.mxu0 %vm449_vm0, %v450_v6 }
   0x2   :  { %v389_v4 = vpack.c.bf16 %v29_v1, %v28_v0  ;;  %v31_v5 = vld [vmem:[%s584_s1 + $0x18] sm:$0xff]  ;;  %v114_v7 = vld [vmem:[%s586_s3] sm:$0xff]  ;;  %394 = vmatprep.subr.bf16.mxu1 %v448_v3  ;;  %v115_v8 = vld [vmem:[%s586_s3 + $0x8] sm:$0xff]  ;;  %380 = vmatprep.mubr.msk.f32.mxu1 %vm449_vm0, %v450_v6 }
   0x3   :  { %v116_v9 = vld [vmem:[%s586_s3 + $0x10] sm:$0xff]  ;;  %v117_v10 = vld [vmem:[%s586_s3 + $0x18] sm:$0xff]  ;;  %v392_v11 = vpack.c.bf16 %v31_v5, %v30_v2  ;;  %v395_v12 = vpack.c.bf16 %v115_v8, %v114_v7  ;;  %v118_v14 = vld [vmem:[%s586_s3 + $0x20] sm:$0xff] }
   0x4   :  { %390 = vmatpush3.bf16.msra.mxu0 %v389_v4  ;;  %v398_v13 = vpack.c.bf16 %v117_v10, %v116_v9  ;;  %v119_v15 = vld [vmem:[%s586_s3 + $0x28] sm:$0xff] }
   0x5   :  { %391 = vmatprep.subr.bf16.mxu0 %v448_v3  ;;  %396 = vmatpush3.bf16.msra.mxu1 %v395_v12 }
   0x6   :  { %397 = vmatprep.subr.bf16.mxu1 %v448_v3 }
   0x7   :  { %12 = vsyncpa [#allocation3], 0  ;;  %v27_v16 = vld [vmem:[%s583_s0] sm:$0xff]  ;;  %vm39_vm1 = vcmask 261120   ;;  %v401_v17 = vpack.c.bf16 %v119_v15, %v118_v14  ;;  %v120_v18 = vld [vmem:[%s586_s3 + $0x30] sm:$0xff]  ;;  %v451_v39 = vmov 0  }
   0x8   :  { %393 = vmatpush3.bf16.msra.mxu0 %v392_v11  ;;  %v121_v19 = vld [vmem:[%s586_s3 + $0x38] sm:$0xff]  ;;  %v122_v21 = vld [vmem:[%s586_s3 + $0x40] sm:$0xff]  ;;  %v123_v22 = vld [vmem:[%s586_s3 + $0x48] sm:$0xff]  ;;  %423 = vset.pattern.permute.xlu0 %v451_v39  ;;  %vm215_vm2 = vcmask 523264   ;;  %vm292_vm3 = vcmask 58368  }
   0x9   :  { %383 = vmatprep.subr.mxu0 %v450_v6  ;;  %399 = vmatpush3.bf16.msra.mxu1 %v398_v13  ;;  %v404_v20 = vpack.c.bf16 %v121_v19, %v120_v18  ;;  %v407_v23 = vpack.c.bf16 %v123_v22, %v122_v21  ;;  %v124_v24 = vld [vmem:[%s586_s3 + $0x50] sm:$0xff]  ;;  %v125_v25 = vld [vmem:[%s586_s3 + $0x58] sm:$0xff]  ;;  %v126_v27 = vld [vmem:[%s586_s3 + $0x60] sm:$0xff] }
   0xa   :  { %400 = vmatprep.subr.bf16.mxu1 %v448_v3  ;;  %v410_v26 = vpack.c.bf16 %v125_v25, %v124_v24  ;;  %v127_v28 = vld [vmem:[%s586_s3 + $0x68] sm:$0xff]  ;;  %v128_v30 = vld [vmem:[%s586_s3 + $0x70] sm:$0xff]  ;;  %v129_v31 = vld [vmem:[%s586_s3 + $0x78] sm:$0xff] }
   0xb   :  { %346 = vmatmul.mubr.msk.f32.vlgmr.msra.gmra.mrb[0].mxu0 %vm39_vm1, %v27_v16  ;;  %v413_v29 = vpack.c.bf16 %v127_v28, %v126_v27  ;;  %v416_v32 = vpack.c.bf16 %v129_v31, %v128_v30  ;;  %v308_v33 = vld [vmem:[%s585_s2] ss:$0 sm:$0xff] }
   0xc   :  { %385 = vmatprep.mubr.msk.f32.mxu0 %vm449_vm0, %v450_v6  ;;  %v209_v38 = vld [vmem:[%s589_s6] sm:$0x3]  ;;  %s452_s6 = smov [#allocation2]  }
   0xd   :  { %402 = vmatpush3.bf16.msra.mxu1 %v401_v17  ;;  %212 = vperm.xlu0 %423, %v209_v38   ;;  %v310_v40 = vld [vmem:[%s587_s4] ss:$0 sm:$0xff]  ;;  %s300_s23 = sshll.u32 %s452_s6, 4  ;;  %s301_s23 = int_to_ptr.vmem [resolvable:$true] %s300_s23 }
   0xe   :  { %403 = vmatprep.subr.bf16.mxu1 %v448_v3  ;;  %v208_v45 = vld [vmem:[%s588_s5] sm:$0x3]  ;;  %s424_s4 = scalar_lea.vmem %s301_s23, 32  ;;  %p429_p1 = scmp.lt.s32.totalorder %s301_s23, %s301_s23 }
   0xf   :  { %p425_p0 = scmp.ne.s32.totalorder %s301_s23, %s424_s4  ;;  %p430_p2 = scmp.lt.s32.totalorder %s424_s4, %s424_s4 }
  0x11   :  { %405 = vmatpush3.bf16.msra.mxu1 %v404_v20  ;;  %p431_p3 = por %p430_p2, %p429_p1 }
  0x12   :  { %406 = vmatprep.subr.bf16.mxu1 %v448_v3 }
  0x13   :  { %p432_p4 = pnand %p431_p3, %p425_p0 }
  0x15   :  { %408 = vmatpush3.bf16.msra.mxu1 %v407_v23 }
  0x16   :  { %409 = vmatprep.subr.bf16.mxu1 %v448_v3 }
  0x19   :  { %411 = vmatpush3.bf16.msra.mxu1 %v410_v26 }
  0x1a   :  { %412 = vmatprep.subr.bf16.mxu1 %v448_v3 }
  0x1d   :  { %414 = vmatpush3.bf16.msra.mxu1 %v413_v29 }
  0x1e   :  { %415 = vmatprep.subr.bf16.mxu1 %v448_v3 }
  0x21   :  { %417 = vmatpush3.bf16.msra.mxu1 %v416_v32 }
  0x8c   :  { %v213_v46 = vpop.permute.xlu0 %212 }
  0xde   :  { %v109_v34 = vpop.f32.mrb[0].mxu0 }
  0xdf   :  { %v110_v35 = vadd.f32 %v308_v33, %v109_v34  ;;  %v347_v36 = vpop.f32.mrb[1].mxu0 }
  0xe1   :  { %v113_v37 = vmax.f32 %v110_v35, 0.0 }
  0xe3   :  { %381 = vmatmul.mubr.f32.vlgmr.msra.gmra.mrb[0].mxu1 %v113_v37 }
 0x1b6   :  { %v203_v41 = vpop.f32.mrb[0].mxu1 }
 0x1b7   :  { %v204_v42 = vadd.f32 %v310_v40, %v203_v41  ;;  %v382_v43 = vpop.f32.mrb[1].mxu1 }
 0x1b9   :  { %v207_v44 = vmax.f32 %v204_v42, 0.0 }
 0x1bb   :  { %384 = vmatpush3.xpose.msk.msra.mxu0 %vm215_vm2, %v207_v44 }
 0x1be   :  { %386 = vmatmul.mubr.msk.f32.vlgmr.msra.gmra.mrb[2].mxu0 %vm215_vm2, %v208_v45 }
 0x291   :  { %v288_v47 = vpop.f32.mrb[2].mxu0 }
 0x292   :  { %v289_v48 = vadd.f32 %v288_v47, %v213_v46  ;;  %v387_v49 = vpop.f32.mrb[3].mxu0 }
 0x294   :  { %293 = vst.msk [vmem:[#allocation2] sm:$0x3] %vm292_vm3, %v289_v48 }
 0x295   :  { %435 = shalt.err (!%p432_p4)
}
 0x296   :  { %s436_s5 = scalar_lea.hbm %s590_s7, 32 }
 0x297   :  { %p437_p5 = scmp.ne.s32.totalorder %s590_s7, %s436_s5  ;;  %p440_p6 = scmp.lt.u32.totalorder %s436_s5, %s590_s7 }
 0x299   :  { %p442_p7 = pnand %p440_p6, %p437_p5 }
 0x29b   :  { %445 = shalt.err (!%p442_p7)
}
 0x29c   :  { %303 = dma.vmem_to_hbm [thread:$0]  %s301_s23, 32, %s590_s7, [#allocation3]  }
 0x29d   :  { %446 = dma.done.wait [#allocation3], 32  }
 0x29e   :  { %447 = vsyncadd [#allocation3], 4294967264 }
 0x29f   :  { %307 = vsyncpa [#allocation3], 1 }

</bundles_post_ra>
